<compile_context>
chip_gen: v5e
topology: v5e:2x2
jax: 0.10.0
libtpu: 0.0.40
codegen_flags: <defaults>
</compile_context>

<pallas_src>
import math

import jax
import jax.numpy as jnp
from jax.experimental import pallas as pl
from jax.experimental.pallas import tpu as pltpu


def _round_up(n, m):
    return ((n + m - 1) // m) * m


def _vmem_capacity_bytes():
    """Physical VMEM of the local TPU generation (fallback: 64 MiB)."""
    try:
        return int(pltpu.get_tpu_info().vmem_capacity_bytes)
    except Exception:
        return 64 * 1024 * 1024


# ---------------------------------------------------------------------------
# Kernels
# ---------------------------------------------------------------------------
def _kernel_resident(x_ref, w1_ref, w2_ref, b2_ref, o_ref):
    """Grid = (row_tiles,). Weights are VMEM-resident (constant index maps)."""
    x = x_ref[...]                                                  # (tm, Dp)
    h = jnp.dot(x, w1_ref[0], preferred_element_type=jnp.float32)   # (tm, Hp)
    y = jnp.dot(h.astype(w2_ref.dtype), w2_ref[...],
                preferred_element_type=jnp.float32)                 # (tm, Dp)
    o_ref[...] = (x.astype(jnp.float32) + b2_ref[...] + y).astype(o_ref.dtype)


def _make_kernel_tiled(n_chunks):
    """Grid = (row_tiles, h_chunks). Resident f32 accumulator across chunks;
    the last chunk's dot is folded directly into the finalize store."""

    def kernel(x_ref, w1_ref, w2_ref, b2_ref, o_ref, acc_ref):
        j = pl.program_id(1)
        x = x_ref[...]                                              # (tm, Dp)
        h = jnp.dot(x, w1_ref[0], preferred_element_type=jnp.float32)  # (tm, th)
        y = jnp.dot(h.astype(w2_ref.dtype), w2_ref[...],
                    preferred_element_type=jnp.float32)             # (tm, Dp)

        @pl.when(j == 0)
        def _():
            acc_ref[...] = y

        @pl.when(jnp.logical_and(j > 0, j < n_chunks - 1))
        def _():
            acc_ref[...] += y

        @pl.when(j == n_chunks - 1)
        def _():
            o_ref[...] = (x.astype(jnp.float32) + b2_ref[...]
                          + acc_ref[...] + y).astype(o_ref.dtype)

    return kernel


# ---------------------------------------------------------------------------
# One-time parameter preparation (NOT per forward)
# ---------------------------------------------------------------------------
def prepare_params(w1, b1, w2, b2, *, weight_dtype=jnp.bfloat16):
    """torch nn.Linear layouts: w1 (2D, D), b1 (2D,), w2 (D, 2D), b2 (D,).

    * Transposes weights into row-major matmul layout, zero-pads D -> Dp
      (multiple of 128) and 2D -> Hp (multiple of 512).
    * Folds b1: b2_eff = b2 + b1 @ W2^T (kept in f32 for accuracy).
    * Casts weights to `weight_dtype` (bf16 by default).
    * Picks the hidden-dim chunk th from the device VMEM budget and stores
      W1^T pre-chunked as (Hp//th, Dp, th) so each chunk is contiguous in HBM.
    """
    w1 = jnp.asarray(w1, jnp.float32)
    b1 = jnp.asarray(b1, jnp.float32)
    w2 = jnp.asarray(w2, jnp.float32)
    b2 = jnp.asarray(b2, jnp.float32)
    H, D = w1.shape
    assert b1.shape == (H,) and w2.shape == (D, H) and b2.shape == (D,)

    Dp = _round_up(D, 128)
    Hp = _round_up(H, 512)          # th never degrades below 256
    wsz = jnp.dtype(weight_dtype).itemsize
    vmem_cap = _vmem_capacity_bytes()

    # Resident fast path if both (double-buffered) weights fit ~half of VMEM.
    if 4 * Dp * Hp * wsz <= vmem_cap // 2:
        th = Hp
    elif 8 * Dp * 512 * wsz <= int(0.4 * vmem_cap):
        th = 512
    else:
        th = 256
    n_chunks = Hp // th

    w1t = jnp.zeros((Dp, Hp), jnp.float32).at[:D, :H].set(w1.T)
    w1c = (w1t.reshape(Dp, n_chunks, th).transpose(1, 0, 2)
           .astype(weight_dtype))                                # (n_chunks, Dp, th)
    w2t = (jnp.zeros((Hp, Dp), jnp.float32).at[:H, :D].set(w2.T)
           .astype(weight_dtype))                                # (Hp, Dp)
    b2_eff = b2 + b1 @ w2.T                                      # exact b1 fold (f32)
    b2p = jnp.zeros((1, Dp), jnp.float32).at[0, :D].set(b2_eff)

    return dict(w1c=w1c, w2t=w2t, b2=b2p,
                D=D, Dp=Dp, H=H, Hp=Hp, th=th, n_chunks=n_chunks)


def _pick_tm(N, sub, cap):
    """Largest row tile <= cap (multiple of `sub`); prefers exact divisors of
    the sublane-padded row count so no wrapper-side row padding is needed."""
    Np0 = _round_up(N, sub)
    if Np0 <= cap:
        return Np0
    t = (cap // sub) * sub
    while t >= max(128, sub):
        if Np0 % t == 0:
            return t
        t -= sub
    return (cap // sub) * sub


def hypernetwork_forward(x, params, *, tm=None):
    """x: (N, D) -> (N, D).  params: output of prepare_params."""
    w1c, w2t, b2p = params["w1c"], params["w2t"], params["b2"]
    D, Dp, Hp = params["D"], params["Dp"], params["Hp"]
    th, n_chunks = params["th"], params["n_chunks"]
    N = x.shape[0]
    assert x.shape == (N, D)

    isz = jnp.dtype(x.dtype).itemsize
    wsz = jnp.dtype(w1c.dtype).itemsize
    sub = max(8, 32 // isz)              # f32: 8, bf16: 16, int8/fp8: 32
    vmem_cap = _vmem_capacity_bytes()

    # ---- row tile: generation-aware cap, then prefer divisors of N ----
    if tm is None:
        cap = 1024 if vmem_cap >= 96 * 1024 * 1024 else 512     # v5e/v6e vs v7x
        io_cap = int(0.35 * vmem_cap) // (4 * Dp * isz)         # x+out dbl-buffered
        cap = max(sub, min(cap, (io_cap // sub) * sub if io_cap >= sub else sub))
        tm = _pick_tm(N, sub, cap)
    assert tm % sub == 0, "row tile must respect the input dtype sublane packing"
    Np = _round_up(N, tm)

    # ---- pad activations only when needed (rows to tm, cols to 128) ----
    if (Np, Dp) != (N, D):
        x_p = jnp.zeros((Np, Dp), x.dtype).at[:N, :D].set(x)
    else:
        x_p = x

    resident = n_chunks == 1
    grid_rows = Np // tm

    # ---- VMEM budget (double-buffered streams + scratch) ----
    needed = (4 * tm * Dp * isz                          # x + out tiles (2 bufs each)
              + 2 * Dp * th * wsz + 2 * th * Dp * wsz    # weight chunk buffers
              + 2 * Dp * 4                               # b2_eff
              + tm * th * 6                              # h (f32) + bf16 copy
              + (0 if resident else tm * Dp * 4))        # accumulator scratch
    vmem_bytes = max(2 * needed, 32 * 1024 * 1024)
    vmem_bytes = min(vmem_bytes, int(0.85 * vmem_cap))
    vmem_bytes = int(min(max(vmem_bytes, needed + (2 << 20)), vmem_cap))

    flops = 4 * Np * Dp * Hp
    weight_bytes = (w1c.size + w2t.size) * wsz
    bytes_accessed = int(2 * Np * Dp * isz + b2p.size * 4
                         + weight_bytes * (1 if resident else grid_rows))

    if resident:
        grid = (grid_rows,)
        in_specs = [
            pl.BlockSpec((tm, Dp), lambda i: (i, 0)),            # x row tile
            pl.BlockSpec((1, Dp, Hp), lambda i: (0, 0, 0)),      # W1^T (resident)
            pl.BlockSpec((Hp, Dp), lambda i: (0, 0)),            # W2^T (resident)
            pl.BlockSpec((1, Dp), lambda i: (0, 0)),             # b2_eff
        ]
        out_spec = pl.BlockSpec((tm, Dp), lambda i: (i, 0))
        kernel = _kernel_resident
        scratch = []
        semantics = ("parallel",)
    else:
        grid = (grid_rows, n_chunks)
        in_specs = [
            pl.BlockSpec((tm, Dp), lambda i, j: (i, 0)),         # x row tile
            pl.BlockSpec((1, Dp, th), lambda i, j: (j, 0, 0)),   # W1^T chunk (contig)
            pl.BlockSpec((th, Dp), lambda i, j: (j, 0)),         # W2^T chunk
            pl.BlockSpec((1, Dp), lambda i, j: (0, 0)),          # b2_eff
        ]
        out_spec = pl.BlockSpec((tm, Dp), lambda i, j: (i, 0))
        kernel = _make_kernel_tiled(n_chunks)
        scratch = [pltpu.VMEM((tm, Dp), jnp.float32)]
        semantics = ("parallel", "arbitrary")

    out = pl.pallas_call(
        kernel,
        out_shape=jax.ShapeDtypeStruct((Np, Dp), x.dtype),
        grid_spec=pltpu.PrefetchScalarGridSpec(
            num_scalar_prefetch=0,
            grid=grid,
            in_specs=in_specs,
            out_specs=out_spec,
            scratch_shapes=scratch,
        ),
        compiler_params=pltpu.CompilerParams(
            dimension_semantics=semantics,
            vmem_limit_bytes=vmem_bytes,
        ),
        cost_estimate=pl.CostEstimate(
            flops=flops, transcendentals=0, bytes_accessed=bytes_accessed),
    )(x_p, w1c, w2t, b2p)

    if (Np, Dp) != (N, D):
        out = out[:N, :D]
    return out


def _torch_linear_init(key, out_features, in_features):
    """Deterministic init matching torch.nn.Linear defaults."""
    kw, kb = jax.random.split(key)
    bound = 1.0 / math.sqrt(in_features)
    w = jax.random.uniform(kw, (out_features, in_features),
                           minval=-bound, maxval=bound, dtype=jnp.float32)
    b = jax.random.uniform(kb, (out_features,),
                           minval=-bound, maxval=bound, dtype=jnp.float32)
    return w, b


if __name__ == "__main__":
    key = jax.random.PRNGKey(0)
    k_x, k_l1, k_l2 = jax.random.split(key, 3)

    batch, seq, dim = 2, 8, 32          # small demo shapes; dim -> 2*dim -> dim
    x = jax.random.normal(k_x, (batch, seq, dim), dtype=jnp.float32)

    # Parameters in torch.nn.Linear layout.
    w1, b1 = _torch_linear_init(k_l1, 2 * dim, dim)       # linear1: dim -> 2*dim
    w2, b2 = _torch_linear_init(k_l2, dim, 2 * dim)       # linear2: 2*dim -> dim

    # One-time prep (transpose + lane padding + bf16 cast + b1 fold).
    params = prepare_params(w1, b1, w2, b2)

    # Flatten tokens; feature dim last (maps to lanes).
    x2d = x.reshape(batch * seq, dim)
    out = hypernetwork_forward(x2d, params).reshape(batch, seq, dim)
    jax.block_until_ready(out)

    # Reference emulating the kernel's bf16 weight / intermediate quantization.
    wdt = params["w1c"].dtype
    w1q = w1.astype(wdt).astype(jnp.float32)
    w2q = w2.astype(wdt).astype(jnp.float32)
    h_ref = (x2d @ w1q.T).astype(wdt).astype(jnp.float32)
    ref = (x2d + h_ref @ w2q.T + (b1 @ w2.T + b2)).reshape(batch, seq, dim)
    assert jnp.allclose(out, ref, atol=1e-2, rtol=1e-2), "mismatch vs quantized ref"

    # Loose sanity check against the pure-f32 module semantics.
    ref_f32 = x + (x @ w1.T + b1) @ w2.T + b2
    assert jnp.allclose(out, ref_f32, atol=5e-2, rtol=5e-2), "mismatch vs f32 ref"

    print("KERNEL_OK")
</pallas_src>

<mosaic_0001>
module attributes {stable_mosaic.version = 11 : i64} {
  func.func @_kernel_resident(%arg0: i32, %arg1: memref<16x128xf32, #tpu.memory_space<vmem>>, %arg2: memref<1x128x512xbf16, #tpu.memory_space<vmem>>, %arg3: memref<512x128xbf16, #tpu.memory_space<vmem>>, %arg4: memref<1x128xf32, #tpu.memory_space<vmem>>, %arg5: memref<16x128xf32, #tpu.memory_space<vmem>>) attributes {dimension_semantics = [#tpu.dimension_semantics<parallel>], iteration_bounds = array<i64: 1>, scalar_prefetch = 0 : i64, scratch_operands = 0 : i64, tpu.core_type = #tpu.core_type<tc>, window_params = [{transform_indices = @transform_0, window_bounds = array<i64: 16, 128>}, {pipeline_mode = #tpu.pipeline_mode<synchronous>, transform_indices = @transform_1, window_bounds = array<i64: 1, 128, 512>}, {pipeline_mode = #tpu.pipeline_mode<synchronous>, transform_indices = @transform_2, window_bounds = array<i64: 512, 128>}, {pipeline_mode = #tpu.pipeline_mode<synchronous>, transform_indices = @transform_3, window_bounds = array<i64: 1, 128>}, {transform_indices = @transform_4, window_bounds = array<i64: 16, 128>}]} {
    %c0 = arith.constant 0 : index
    %c0_0 = arith.constant 0 : index
    %0 = vector.load %arg1[%c0, %c0_0] : memref<16x128xf32, #tpu.memory_space<vmem>>, vector<16x128xf32>
    %c0_1 = arith.constant 0 : index
    %c0_2 = arith.constant 0 : index
    %c0_3 = arith.constant 0 : index
    %1 = vector.load %arg2[%c0_1, %c0_2, %c0_3] : memref<1x128x512xbf16, #tpu.memory_space<vmem>>, vector<1x128x512xbf16>
    %2 = vector.shape_cast %1 : vector<1x128x512xbf16> to vector<128x512xbf16>
    %cst = arith.constant dense<0.000000e+00> : vector<16x512xf32>
    %3 = tpu.matmul %0, %2, %cst {dimension_numbers = #tpu.dot_dimension_numbers<[1], [0], [0], [1], [0, 0, 1, 1], [], []>} : vector<16x128xf32>, vector<128x512xbf16>, vector<16x512xf32> -> vector<16x512xf32>
    %4 = arith.truncf %3 : vector<16x512xf32> to vector<16x512xbf16>
    %c0_4 = arith.constant 0 : index
    %c0_5 = arith.constant 0 : index
    %5 = vector.load %arg3[%c0_4, %c0_5] : memref<512x128xbf16, #tpu.memory_space<vmem>>, vector<512x128xbf16>
    %cst_6 = arith.constant dense<0.000000e+00> : vector<16x128xf32>
    %6 = tpu.matmul %4, %5, %cst_6 {dimension_numbers = #tpu.dot_dimension_numbers<[1], [0], [0], [1], [0, 0, 1, 1], [], []>} : vector<16x512xbf16>, vector<512x128xbf16>, vector<16x128xf32> -> vector<16x128xf32>
    %c0_7 = arith.constant 0 : index
    %c0_8 = arith.constant 0 : index
    %7 = vector.load %arg4[%c0_7, %c0_8] : memref<1x128xf32, #tpu.memory_space<vmem>>, vector<1x128xf32>
    %8 = vector.broadcast %7 : vector<1x128xf32> to vector<16x128xf32>
    %9 = arith.addf %0, %8 : vector<16x128xf32>
    %10 = arith.addf %9, %6 : vector<16x128xf32>
    %c0_9 = arith.constant 0 : index
    %c0_10 = arith.constant 0 : index
    %11 = vector.load %arg5[%c0_9, %c0_10] : memref<16x128xf32, #tpu.memory_space<vmem>>, vector<16x128xf32>
    tpu.vector_store %arg5[%c0_9, %c0_10], %10 {strides = array<i32>} : memref<16x128xf32, #tpu.memory_space<vmem>>, vector<16x128xf32>,
    return
  }
  func.func @transform_0(%arg0: i32) -> (i32, i32) {
    %c0_i32 = arith.constant 0 : i32
    %c0_i32_0 = arith.constant 0 : i32
    return %arg0, %c0_i32 : i32, i32
  }
  func.func @transform_1(%arg0: i32) -> (i32, i32, i32) {
    %c0_i32 = arith.constant 0 : i32
    %c0_i32_0 = arith.constant 0 : i32
    %c0_i32_1 = arith.constant 0 : i32
    %c0_i32_2 = arith.constant 0 : i32
    return %c0_i32, %c0_i32_0, %c0_i32_1 : i32, i32, i32
  }
  func.func @transform_2(%arg0: i32) -> (i32, i32) {
    %c0_i32 = arith.constant 0 : i32
    %c0_i32_0 = arith.constant 0 : i32
    %c0_i32_1 = arith.constant 0 : i32
    return %c0_i32, %c0_i32_0 : i32, i32
  }
  func.func @transform_3(%arg0: i32) -> (i32, i32) {
    %c0_i32 = arith.constant 0 : i32
    %c0_i32_0 = arith.constant 0 : i32
    %c0_i32_1 = arith.constant 0 : i32
    return %c0_i32, %c0_i32_0 : i32, i32
  }
  func.func @transform_4(%arg0: i32) -> (i32, i32) {
    %c0_i32 = arith.constant 0 : i32
    %c0_i32_0 = arith.constant 0 : i32
    return %arg0, %c0_i32 : i32, i32
  }
}

</mosaic_0001>

<bundles_post_ra>
// kernel: tpu_custom_call.1
= control target key start
LH: loop header
LB: loop body
LE: loop exit
PB: predicated region body
PF: predicated region fallthrough
CT: control target
= control target key end

     0   :  { %9 = vsyncpa [#allocation3], 0  ;;  %s1168_s0 = inlined_call_operand.hbm [shape: f32[16,128], index: 0, kind: input, shape index: {}]   ;;  %s1169_s1 = inlined_call_operand.hbm [shape: bf16[1,128,512], index: 1, kind: input, shape index: {}]   ;;  %s1170_s2 = inlined_call_operand.hbm [shape: bf16[512,128], index: 2, kind: input, shape index: {}]   ;;  %s1171_s3 = inlined_call_operand.vmem [shape: f32[1,128], index: 3, kind: input, shape index: {}]   ;;  %s1172_s4 = inlined_call_operand.hbm [shape: f32[16,128], index: 4, kind: output, shape index: {}]  }
   0x1   :  { %10 = vsyncpa [#allocation6], 0  ;;  %s29_s17 = sshll.u32 %s1169_s1, 4  ;;  %s30_s17 = int_to_ptr.hbm [resolvable:$true] %s29_s17 }
   0x2   :  { %11 = vsyncpa [#allocation4], 0  ;;  %s1098_s18 = smov [#allocation5]   ;;  %s16_s22 = sshll.u32 %s1168_s0, 4  ;;  %s17_s22 = int_to_ptr.hbm [resolvable:$true] %s16_s22 }
   0x3   :  { %s31_s19 = sshll.u32 %s1098_s18, 4  ;;  %s1099_s23 = smov 256   ;;  %s32_s19 = int_to_ptr.vmem [resolvable:$true] %s31_s19 }
   0x4   :  { %s1100_s24 = smov 16   ;;  %s1101_s25 = smov [#allocation2]  }
   0x5   :  { %37 = dma.hbm_to_vmem [thread:$0]  %s30_s17, 4096, %s32_s19, [#allocation6], %s1099_s23, %s1099_s23, %s1100_s24  }
   0x6   :  { %s18_s26 = sshll.u32 %s1101_s25, 4  ;;  %s1102_s27 = smov 128   ;;  %s19_s26 = int_to_ptr.vmem [resolvable:$true] %s18_s26 }
   0x7   :  { %s1103_s28 = smov 8   ;;  %s42_s30 = sshll.u32 %s1170_s2, 4  ;;  %s43_s30 = int_to_ptr.hbm [resolvable:$true] %s42_s30 }
   0x8   :  { %24 = dma.hbm_to_vmem [thread:$0]  %s17_s22, 256, %s19_s26, [#allocation3], %s1102_s27, %s1102_s27, %s1103_s28  }
   0x9   :  { %s1104_s5 = smov [#allocation7]   ;;  %s1105_s6 = smov 64  }
   0xa   :  { %s44_s0 = sshll.u32 %s1104_s5, 4  ;;  %s1106_s7 = smov 4   ;;  %s45_s0 = int_to_ptr.vmem [resolvable:$true] %s44_s0 }
   0xb   :  { %50 = dma.hbm_to_vmem [thread:$0]  %s43_s30, 4096, %s45_s0, [#allocation6], %s1105_s6, %s1105_s6, %s1106_s7  }
   0xc   :  { %1092 = dma.done.wait [#allocation3], 256  }
   0xd   :  { %1093 = vsyncadd [#allocation3], 4294967040 }
   0xe   :  { %1094 = dma.done.wait [#allocation6], 8192  }
   0xf   :  { %1095 = vsyncadd [#allocation6], 4294959104  ;;  %v779_v0 = vld [vmem:[#allocation5 + $0xe0] sm:$0xf]  ;;  %v951_v1 = vld [vmem:[#allocation5 + $0xec] sm:$0xf0] }
  0x10   :  { %v949_v2 = vld [vmem:[#allocation5 + $0xe4] sm:$0xf]  ;;  %v780_v3 = vor.u32 %v951_v1, %v779_v0  ;;  %v781_v4 = vld [vmem:[#allocation5 + $0xf0] sm:$0xf0]  ;;  %v787_v5 = vld [vmem:[#allocation5 + $0xe8] sm:$0xf] }
  0x11   :  { %v952_v6 = vld [vmem:[#allocation5 + $0xf4] sm:$0xf0]  ;;  %v784_v7 = vor.u32 %v949_v2, %v781_v4  ;;  %v950_v9 = vld [vmem:[#allocation5 + $0xec] sm:$0xf]  ;;  %v789_v10 = vld [vmem:[#allocation5 + $0xf8] sm:$0xf0] }
  0x12   :  { %v788_v8 = vor.u32 %v952_v6, %v787_v5  ;;  %v763_v11 = vld [vmem:[#allocation5 + $0xc0] sm:$0xf]  ;;  %259 = vmatpush.bf16.msra.mxu0 %v780_v3  ;;  %v792_v12 = vor.u32 %v950_v9, %v789_v10  ;;  %v947_v13 = vld [vmem:[#allocation5 + $0xcc] sm:$0xf0]  ;;  %v945_v14 = vld [vmem:[#allocation5 + $0xc4] sm:$0xf] }
  0x13   :  { %v765_v15 = vld [vmem:[#allocation5 + $0xd0] sm:$0xf0]  ;;  %274 = vmatpush.bf16.msra.mxu1 %v784_v7  ;;  %v764_v16 = vor.u32 %v947_v13, %v763_v11  ;;  %v771_v18 = vld [vmem:[#allocation5 + $0xc8] sm:$0xf]  ;;  %v948_v19 = vld [vmem:[#allocation5 + $0xd4] sm:$0xf0] }
  0x14   :  { %289 = vmatpush.bf16.msra.mxu2 %v788_v8  ;;  %v768_v17 = vor.u32 %v945_v14, %v765_v15  ;;  %v946_v20 = vld [vmem:[#allocation5 + $0xcc] sm:$0xf]  ;;  %304 = vmatpush.bf16.msra.mxu3 %v792_v12  ;;  %v772_v21 = vor.u32 %v948_v19, %v771_v18  ;;  %v773_v22 = vld [vmem:[#allocation5 + $0xd8] sm:$0xf0]  ;;  %v747_v23 = vld [vmem:[#allocation5 + $0xa0] sm:$0xf] }
  0x15   :  { %v943_v24 = vld [vmem:[#allocation5 + $0xac] sm:$0xf0]  ;;  %v776_v25 = vor.u32 %v946_v20, %v773_v22  ;;  %v941_v26 = vld [vmem:[#allocation5 + $0xa4] sm:$0xf]  ;;  %v749_v27 = vld [vmem:[#allocation5 + $0xb0] sm:$0xf0] }
  0x16   :  { %v755_v28 = vld [vmem:[#allocation5 + $0xa8] sm:$0xf]  ;;  %260 = vmatpush.bf16.msra.mxu0 %v764_v16  ;;  %v748_v29 = vor.u32 %v943_v24, %v747_v23  ;;  %v944_v30 = vld [vmem:[#allocation5 + $0xb4] sm:$0xf0]  ;;  %v942_v31 = vld [vmem:[#allocation5 + $0xac] sm:$0xf]  ;;  %v752_v33 = vor.u32 %v941_v26, %v749_v27 }
  0x17   :  { %v757_v32 = vld [vmem:[#allocation5 + $0xb8] sm:$0xf0]  ;;  %275 = vmatpush.bf16.msra.mxu1 %v768_v17  ;;  %v756_v34 = vor.u32 %v944_v30, %v755_v28  ;;  %v731_v35 = vld [vmem:[#allocation5 + $0x80] sm:$0xf]  ;;  %v939_v36 = vld [vmem:[#allocation5 + $0x8c] sm:$0xf0] }
  0x18   :  { %290 = vmatpush.bf16.msra.mxu2 %v772_v21  ;;  %v937_v37 = vld [vmem:[#allocation5 + $0x84] sm:$0xf]  ;;  %305 = vmatpush.bf16.msra.mxu3 %v776_v25  ;;  %v760_v38 = vor.u32 %v942_v31, %v757_v32  ;;  %v733_v39 = vld [vmem:[#allocation5 + $0x90] sm:$0xf0]  ;;  %v739_v40 = vld [vmem:[#allocation5 + $0x88] sm:$0xf]  ;;  %v732_v44 = vor.u32 %v939_v36, %v731_v35 }
  0x19   :  { %v940_v41 = vld [vmem:[#allocation5 + $0x94] sm:$0xf0]  ;;  %v938_v42 = vld [vmem:[#allocation5 + $0x8c] sm:$0xf]  ;;  %v741_v43 = vld [vmem:[#allocation5 + $0x98] sm:$0xf0]  ;;  %v736_v45 = vor.u32 %v937_v37, %v733_v39 }
  0x1a   :  { %261 = vmatpush.bf16.msra.mxu0 %v748_v29  ;;  %v740_v46 = vor.u32 %v940_v41, %v739_v40  ;;  %v715_v47 = vld [vmem:[#allocation5 + $0x60] sm:$0xf]  ;;  %v935_v48 = vld [vmem:[#allocation5 + $0x6c] sm:$0xf0]  ;;  %v933_v49 = vld [vmem:[#allocation5 + $0x64] sm:$0xf]  ;;  %v744_v50 = vor.u32 %v938_v42, %v741_v43 }
  0x1b   :  { %276 = vmatpush.bf16.msra.mxu1 %v752_v33  ;;  %v717_v51 = vld [vmem:[#allocation5 + $0x70] sm:$0xf0]  ;;  %v723_v52 = vld [vmem:[#allocation5 + $0x68] sm:$0xf]  ;;  %v936_v53 = vld [vmem:[#allocation5 + $0x74] sm:$0xf0]  ;;  %v716_v56 = vor.u32 %v935_v48, %v715_v47 }
  0x1c   :  { %291 = vmatpush.bf16.msra.mxu2 %v756_v34  ;;  %306 = vmatpush.bf16.msra.mxu3 %v760_v38  ;;  %v934_v54 = vld [vmem:[#allocation5 + $0x6c] sm:$0xf]  ;;  %v725_v55 = vld [vmem:[#allocation5 + $0x78] sm:$0xf0]  ;;  %v720_v57 = vor.u32 %v933_v49, %v717_v51  ;;  %v724_v58 = vor.u32 %v936_v53, %v723_v52  ;;  %v699_v59 = vld [vmem:[#allocation5 + $0x40] sm:$0xf] }
  0x1d   :  { %v931_v60 = vld [vmem:[#allocation5 + $0x4c] sm:$0xf0]  ;;  %v929_v61 = vld [vmem:[#allocation5 + $0x44] sm:$0xf]  ;;  %v728_v62 = vor.u32 %v934_v54, %v725_v55  ;;  %v701_v63 = vld [vmem:[#allocation5 + $0x50] sm:$0xf0] }
  0x1e   :  { %262 = vmatpush.bf16.msra.mxu0 %v732_v44  ;;  %v707_v0 = vld [vmem:[#allocation5 + $0x48] sm:$0xf]  ;;  %v932_v1 = vld [vmem:[#allocation5 + $0x54] sm:$0xf0]  ;;  %v930_v2 = vld [vmem:[#allocation5 + $0x4c] sm:$0xf]  ;;  %v700_v4 = vor.u32 %v931_v60, %v699_v59  ;;  %v704_v5 = vor.u32 %v929_v61, %v701_v63 }
  0x1f   :  { %277 = vmatpush.bf16.msra.mxu1 %v736_v45  ;;  %v709_v3 = vld [vmem:[#allocation5 + $0x58] sm:$0xf0]  ;;  %v708_v6 = vor.u32 %v932_v1, %v707_v0  ;;  %v683_v7 = vld [vmem:[#allocation5 + $0x20] sm:$0xf]  ;;  %v927_v8 = vld [vmem:[#allocation5 + $0x2c] sm:$0xf0] }
  0x20   :  { %292 = vmatpush.bf16.msra.mxu2 %v740_v46  ;;  %307 = vmatpush.bf16.msra.mxu3 %v744_v50  ;;  %v925_v9 = vld [vmem:[#allocation5 + $0x24] sm:$0xf]  ;;  %v712_v10 = vor.u32 %v930_v2, %v709_v3  ;;  %v685_v11 = vld [vmem:[#allocation5 + $0x30] sm:$0xf0]  ;;  %v691_v12 = vld [vmem:[#allocation5 + $0x28] sm:$0xf]  ;;  %v684_v16 = vor.u32 %v927_v8, %v683_v7 }
  0x21   :  { %v928_v13 = vld [vmem:[#allocation5 + $0x34] sm:$0xf0]  ;;  %v926_v14 = vld [vmem:[#allocation5 + $0x2c] sm:$0xf]  ;;  %v693_v15 = vld [vmem:[#allocation5 + $0x38] sm:$0xf0]  ;;  %v688_v17 = vor.u32 %v925_v9, %v685_v11 }
  0x22   :  { %263 = vmatpush.bf16.msra.mxu0 %v716_v56  ;;  %v692_v18 = vor.u32 %v928_v13, %v691_v12  ;;  %v667_v19 = vld [vmem:[#allocation5] sm:$0xf]  ;;  %v923_v20 = vld [vmem:[#allocation5 + $0xc] sm:$0xf0]  ;;  %v921_v21 = vld [vmem:[#allocation5 + $0x4] sm:$0xf]  ;;  %v696_v22 = vor.u32 %v926_v14, %v693_v15 }
  0x23   :  { %278 = vmatpush.bf16.msra.mxu1 %v720_v57  ;;  %v669_v23 = vld [vmem:[#allocation5 + $0x10] sm:$0xf0]  ;;  %v675_v24 = vld [vmem:[#allocation5 + $0x8] sm:$0xf]  ;;  %v924_v25 = vld [vmem:[#allocation5 + $0x14] sm:$0xf0]  ;;  %v668_v28 = vor.u32 %v923_v20, %v667_v19 }
  0x24   :  { %293 = vmatpush.bf16.msra.mxu2 %v724_v58  ;;  %308 = vmatpush.bf16.msra.mxu3 %v728_v62  ;;  %v922_v26 = vld [vmem:[#allocation5 + $0xc] sm:$0xf]  ;;  %v677_v27 = vld [vmem:[#allocation5 + $0x18] sm:$0xf0]  ;;  %v672_v29 = vor.u32 %v921_v21, %v669_v23  ;;  %v676_v30 = vor.u32 %v924_v25, %v675_v24  ;;  %v1145_v34 = vld [vmem:[#allocation2] sm:$0xff]  ;;  %s1107_s9 = smov [#allocation8]  }
  0x25   :  { %v680_v31 = vor.u32 %v922_v26, %v677_v27  ;;  %v960_v32 = vld [vmem:[#allocation7 + $0x38] sm:$0xff]  ;;  %v959_v36 = vld [vmem:[#allocation7 + $0x30] sm:$0xff]  ;;  %v958_v40 = vld [vmem:[#allocation7 + $0x28] sm:$0xff]  ;;  %s649_s10 = sshll.u32 %s1107_s9, 4  ;;  %s651_s12 = sshll.u32 %s1172_s4, 4  ;;  %s650_s10 = int_to_ptr.vmem [resolvable:$true] %s649_s10  ;;  %s652_s12 = int_to_ptr.hbm [resolvable:$true] %s651_s12 }
  0x26   :  { %264 = vmatpush.bf16.msra.mxu0 %v700_v4  ;;  %v968_v33 = vld [vmem:[#allocation7 + $0x78] sm:$0xff]  ;;  %v967_v38 = vld [vmem:[#allocation7 + $0x70] sm:$0xff]  ;;  %v966_v42 = vld [vmem:[#allocation7 + $0x68] sm:$0xff] }
  0x27   :  { %279 = vmatpush.bf16.msra.mxu1 %v704_v5  ;;  %v976_v35 = vld [vmem:[#allocation7 + $0xb8] sm:$0xff]  ;;  %v975_v39 = vld [vmem:[#allocation7 + $0xb0] sm:$0xff]  ;;  %v974_v44 = vld [vmem:[#allocation7 + $0xa8] sm:$0xff] }
  0x28   :  { %294 = vmatpush.bf16.msra.mxu2 %v708_v6  ;;  %309 = vmatpush.bf16.msra.mxu3 %v712_v10  ;;  %v984_v37 = vld [vmem:[#allocation7 + $0xf8] sm:$0xff]  ;;  %v983_v41 = vld [vmem:[#allocation7 + $0xf0] sm:$0xff]  ;;  %v957_v45 = vld [vmem:[#allocation7 + $0x20] sm:$0xff] }
  0x29   :  { %v1151_v43 = vld [vmem:[#allocation2 + $0x8] sm:$0xff]  ;;  %v982_v46 = vld [vmem:[#allocation7 + $0xe8] sm:$0xff]  ;;  %v965_v47 = vld [vmem:[#allocation7 + $0x60] sm:$0xff] }
  0x2a   :  { %265 = vmatpush.bf16.msra.mxu0 %v684_v16  ;;  %v973_v48 = vld [vmem:[#allocation7 + $0xa0] sm:$0xff]  ;;  %v956_v49 = vld [vmem:[#allocation7 + $0x18] sm:$0xff]  ;;  %v955_v52 = vld [vmem:[#allocation7 + $0x10] sm:$0xff] }
  0x2b   :  { %280 = vmatpush.bf16.msra.mxu1 %v688_v17  ;;  %v981_v50 = vld [vmem:[#allocation7 + $0xe0] sm:$0xff]  ;;  %v964_v51 = vld [vmem:[#allocation7 + $0x58] sm:$0xff]  ;;  %v963_v53 = vld [vmem:[#allocation7 + $0x50] sm:$0xff] }
  0x2c   :  { %295 = vmatpush.bf16.msra.mxu2 %v692_v18  ;;  %310 = vmatpush.bf16.msra.mxu3 %v696_v22  ;;  %v972_v54 = vld [vmem:[#allocation7 + $0x98] sm:$0xff]  ;;  %v954_v56 = vld [vmem:[#allocation7 + $0x8] sm:$0xff]  ;;  %v971_v58 = vld [vmem:[#allocation7 + $0x90] sm:$0xff] }
  0x2d   :  { %v980_v55 = vld [vmem:[#allocation7 + $0xd8] sm:$0xff]  ;;  %v962_v57 = vld [vmem:[#allocation7 + $0x48] sm:$0xff]  ;;  %v979_v59 = vld [vmem:[#allocation7 + $0xd0] sm:$0xff] }
  0x2e   :  { %266 = vmatpush.bf16.msra.mxu0 %v668_v28  ;;  %v953_v60 = vld [vmem:[#allocation7] sm:$0xff]  ;;  %v970_v62 = vld [vmem:[#allocation7 + $0x88] sm:$0xff]  ;;  %v995_v16 = vld [vmem:[%s1171_s3] ss:$0 sm:$0xff] }
  0x2f   :  { %281 = vmatpush.bf16.msra.mxu1 %v672_v29  ;;  %v961_v61 = vld [vmem:[#allocation7 + $0x40] sm:$0xff]  ;;  %v978_v63 = vld [vmem:[#allocation7 + $0xc8] sm:$0xff]  ;;  %v639_v21 = vadd.f32 %v995_v16, %v1145_v34  ;;  %v640_v29 = vadd.f32 %v995_v16, %v1151_v43 }
  0x30   :  { %296 = vmatpush.bf16.msra.mxu2 %v676_v30  ;;  %311 = vmatpush.bf16.msra.mxu3 %v680_v31  ;;  %v969_v0 = vld [vmem:[#allocation7 + $0x80] sm:$0xff] }
  0x31   :  { %267 = vmatmul.f32.vlgmr.msra.gmra.mxu0 %v1145_v34  ;;  %v977_v1 = vld [vmem:[#allocation7 + $0xc0] sm:$0xff] }
  0x32   :  { %579 = vmatpush.bf16.msrb.mxu0 %v960_v32  ;;  %282 = vmatmul.f32.vlgmr.msra.gmra.mxu1 %v1145_v34 }
  0x33   :  { %593 = vmatpush.bf16.msrb.mxu1 %v968_v33  ;;  %297 = vmatmul.f32.vlgmr.msra.gmra.mxu2 %v1145_v34 }
  0x34   :  { %312 = vmatmul.f32.vlgmr.msra.gmra.mxu3 %v1145_v34  ;;  %607 = vmatpush.bf16.msrb.mxu2 %v976_v35 }
  0x35   :  { %621 = vmatpush.bf16.msrb.mxu3 %v984_v37 }
  0x36   :  { %580 = vmatpush.bf16.msrb.mxu0 %v959_v36 }
  0x37   :  { %594 = vmatpush.bf16.msrb.mxu1 %v967_v38 }
  0x38   :  { %608 = vmatpush.bf16.msrb.mxu2 %v975_v39 }
  0x39   :  { %622 = vmatpush.bf16.msrb.mxu3 %v983_v41  ;;  %270 = vmatmul.f32.gmra.mxu0 %v1151_v43 }
  0x3a   :  { %581 = vmatpush.bf16.msrb.mxu0 %v958_v40  ;;  %285 = vmatmul.f32.gmra.mxu1 %v1151_v43 }
  0x3b   :  { %595 = vmatpush.bf16.msrb.mxu1 %v966_v42  ;;  %300 = vmatmul.f32.gmra.mxu2 %v1151_v43 }
  0x3c   :  { %315 = vmatmul.f32.gmra.mxu3 %v1151_v43  ;;  %609 = vmatpush.bf16.msrb.mxu2 %v974_v44 }
  0x3d   :  { %623 = vmatpush.bf16.msrb.mxu3 %v982_v46 }
  0x3e   :  { %582 = vmatpush.bf16.msrb.mxu0 %v957_v45 }
  0x3f   :  { %596 = vmatpush.bf16.msrb.mxu1 %v965_v47 }
  0x40   :  { %610 = vmatpush.bf16.msrb.mxu2 %v973_v48 }
  0x41   :  { %624 = vmatpush.bf16.msrb.mxu3 %v981_v50 }
  0x42   :  { %583 = vmatpush.bf16.msrb.mxu0 %v956_v49 }
  0x43   :  { %597 = vmatpush.bf16.msrb.mxu1 %v964_v51 }
  0x44   :  { %611 = vmatpush.bf16.msrb.mxu2 %v972_v54 }
  0x45   :  { %625 = vmatpush.bf16.msrb.mxu3 %v980_v55 }
  0x46   :  { %584 = vmatpush.bf16.msrb.mxu0 %v955_v52 }
  0x47   :  { %598 = vmatpush.bf16.msrb.mxu1 %v963_v53 }
  0x48   :  { %612 = vmatpush.bf16.msrb.mxu2 %v971_v58 }
  0x49   :  { %626 = vmatpush.bf16.msrb.mxu3 %v979_v59 }
  0x4a   :  { %585 = vmatpush.bf16.msrb.mxu0 %v954_v56 }
  0x4b   :  { %599 = vmatpush.bf16.msrb.mxu1 %v962_v57 }
  0x4c   :  { %613 = vmatpush.bf16.msrb.mxu2 %v970_v62 }
  0x4d   :  { %627 = vmatpush.bf16.msrb.mxu3 %v978_v63 }
  0x4e   :  { %586 = vmatpush.bf16.msrb.mxu0 %v953_v60 }
  0x4f   :  { %600 = vmatpush.bf16.msrb.mxu1 %v961_v61 }
  0x50   :  { %614 = vmatpush.bf16.msrb.mxu2 %v969_v0 }
  0x51   :  { %628 = vmatpush.bf16.msrb.mxu3 %v977_v1 }
  0xae   :  { %v268_v2 = vpop.f32.mrf.mxu0 }
  0xaf   :  { %v283_v3 = vpop.f32.mrf.mxu1 }
  0xb6   :  { %v298_v4 = vpop.f32.mrf.mxu2  ;;  %v271_v6 = vpop.f32.mrf.mxu0 }
  0xb7   :  { %v313_v5 = vpop.f32.mrf.mxu3  ;;  %v319_v7 = vpack.c.bf16 %v271_v6, %v268_v2  ;;  %v286_v8 = vpop.f32.mrf.mxu1 }
  0xb8   :  { %v320_v9 = vpack.c.bf16 %v286_v8, %v283_v3 }
  0xb9   :  { %587 = vmatmul.bf16.vlgmr.msrb.gmra.mxu0 %v319_v7 }
  0xba   :  { %601 = vmatmul.bf16.vlgmr.msrb.gmra.mxu1 %v320_v9 }
  0xbe   :  { %v301_v10 = vpop.f32.mrf.mxu2 }
  0xbf   :  { %v321_v11 = vpack.c.bf16 %v301_v10, %v298_v4  ;;  %v316_v12 = vpop.f32.mrf.mxu3 }
  0xc0   :  { %v322_v13 = vpack.c.bf16 %v316_v12, %v313_v5 }
  0xc1   :  { %615 = vmatmul.bf16.vlgmr.msrb.gmra.mxu2 %v321_v11 }
  0xc2   :  { %629 = vmatmul.bf16.vlgmr.msrb.gmra.mxu3 %v322_v13 }
 0x136   :  { %v588_v14 = vpop.f32.mrf.mxu0 }
 0x137   :  { %v602_v15 = vpop.f32.mrf.mxu1 }
 0x138   :  { %v603_v17 = vadd.f32 %v602_v15, %v588_v14 }
 0x13e   :  { %v590_v23 = vpop.f32.mrf.mxu0 }
 0x13f   :  { %v604_v24 = vpop.f32.mrf.mxu1 }
 0x140   :  { %v605_v26 = vadd.f32 %v604_v24, %v590_v23 }
 0x144   :  { %v616_v18 = vpop.f32.mrf.mxu2 }
 0x145   :  { %v617_v19 = vadd.f32 %v616_v18, %v603_v17  ;;  %v630_v20 = vpop.f32.mrf.mxu3 }
 0x147   :  { %v631_v22 = vadd.f32 %v630_v20, %v617_v19 }
 0x149   :  { %v641_v25 = vadd.f32 %v639_v21, %v631_v22 }
 0x14b   :  { %643 = vst [vmem:[#allocation8] sm:$0xff] %v641_v25 }
 0x14c   :  { %v618_v27 = vpop.f32.mrf.mxu2 }
 0x14d   :  { %v619_v28 = vadd.f32 %v618_v27, %v605_v26  ;;  %v632_v30 = vpop.f32.mrf.mxu3 }
 0x14f   :  { %v633_v31 = vadd.f32 %v632_v30, %v619_v28 }
 0x151   :  { %v642_v32 = vadd.f32 %v640_v29, %v633_v31 }
 0x153   :  { %644 = vst [vmem:[#allocation8 + $0x8] sm:$0xff] %v642_v32 }
 0x154   :  { %657 = dma.vmem_to_hbm [thread:$0]  %s650_s10, 256, %s652_s12, [#allocation4], %s1102_s27, %s1102_s27, %s1103_s28  }
 0x155   :  { %1096 = dma.done.wait [#allocation4], 256  }
 0x156   :  { %1097 = vsyncadd [#allocation4], 4294967040 }
 0x157   :  { %662 = vsyncpa [#allocation3], 1 }
 0x158   :  { %663 = vsyncpa [#allocation6], 1 }
 0x159   :  { %664 = vsyncpa [#allocation4], 1 }

</bundles_post_ra>
